<compile_context>
chip_gen: v7x
topology: tpu7x:2x2x1
jax: 0.10.0
libtpu: 0.0.40
codegen_flags: <defaults>
</compile_context>

<pallas_src>
import jax
import jax.numpy as jnp
from jax.experimental import pallas as pl
from jax.experimental.pallas import tpu as pltpu

K = 7          # conv kernel size
PAD = 3        # (K - 1) // 2
BN_EPS = 1e-5  # PyTorch BatchNorm1d default


def down_kernel(xp_ref, w1_ref, g1_ref, b1_ref, w2_ref, g2_ref, b2_ref, o_ref):
    # xp_ref : (N, Cin, Lp)    pooled input, NCL, Lp on lanes
    # w1_ref : (K, Cmid, Cin)  w1_ref[k][o, i] == torch_w1[o, i, k]
    # w2_ref : (K, Cout, Cmid)
    # g*/b*  : (C, 1)          BN affine params (lane-broadcast)
    # o_ref  : (N, Cout, Lp)
    N, Cin, Lp = xp_ref.shape
    NL = N * Lp

    # Local position t within each length-Lp segment of the flattened lane axis.
    t_iota = jax.lax.broadcasted_iota(jnp.int32, (1, Lp), 1)
    lane_t = jnp.concatenate([t_iota] * N, axis=-1)          # (1, N*Lp)

    def conv1d(a, w_ref):
        # a: (Ci, N*Lp); w_ref: (K, Co, Ci)  ->  (Co, N*Lp)
        # Conv as K accumulated matmuls over roll-shifted taps (no im2col slab).
        Co = w_ref.shape[1]
        acc = jnp.zeros((Co, NL), jnp.float32)
        for k in range(K):
            s = k - PAD                                      # tap offset in [-3, 3]
            if s == 0:
                tap = a
            else:
                # tap[c, p] = a[c, p + s]; zero where t + s falls outside [0, Lp)
                rolled = pltpu.roll(a, shift=(-s) % NL, axis=1)
                valid = (lane_t + s >= 0) & (lane_t + s < Lp)
                tap = jnp.where(valid, rolled, 0.0)
            acc = acc + jnp.dot(w_ref[k], tap,
                                preferred_element_type=jnp.float32)
        return acc

    def bn_relu(y, g_ref, b_ref):
        # Training-mode BatchNorm1d: batch stats over all N*Lp lanes per channel,
        # biased variance via the centered two-pass form (no cancellation risk).
        m = jnp.mean(y, axis=1, keepdims=True)               # (Co, 1)
        c = y - m
        v = jnp.mean(c * c, axis=1, keepdims=True)           # (Co, 1), >= 0
        return jnp.maximum(
            c * jax.lax.rsqrt(v + BN_EPS) * g_ref[...] + b_ref[...], 0.0)

    # (N, Cin, Lp) -> (Cin, N*Lp): channels on sublanes, (n, t) on lanes.
    x2d = jnp.concatenate([xp_ref[n] for n in range(N)], axis=-1)

    h = bn_relu(conv1d(x2d, w1_ref), g1_ref, b1_ref)         # (Cmid, N*Lp)
    y = bn_relu(conv1d(h, w2_ref), g2_ref, b2_ref)           # (Cout, N*Lp)

    # Lane-dense output: one aligned (Cout, Lp) slab store per batch element.
    for n in range(N):
        o_ref[n] = y[:, n * Lp:(n + 1) * Lp]


@jax.jit
def down_forward(x_ncl, w1, g1, b1, w2, g2, b2):
    """x_ncl: (N, Cin, L) f32.  w* in PyTorch layout (Cout, Cin, K), g*/b* = (C,).
    Returns (N, Cout, L // 2)."""
    N, Cin, L = x_ncl.shape
    assert L % 2 == 0
    Lp = L // 2
    Cmid = w1.shape[0]
    Cout = w2.shape[0]

    # MaxPool1d(2): free row-major reshape + max over the trailing pair axis.
    xp = jnp.max(x_ncl.reshape(N, Cin, Lp, 2), axis=-1)      # (N, Cin, Lp)

    # Per-tap conv matrices: w*t[k] is the (Cout, Cin) matrix for tap k.
    w1t = jnp.transpose(w1, (2, 0, 1))                       # (K, Cmid, Cin)
    w2t = jnp.transpose(w2, (2, 0, 1))                       # (K, Cout, Cmid)

    g1c = g1.reshape(Cmid, 1)
    b1c = b1.reshape(Cmid, 1)
    g2c = g2.reshape(Cout, 1)
    b2c = b2.reshape(Cout, 1)

    def full(shape):
        nd = len(shape)
        return pl.BlockSpec(shape, lambda i, nd=nd: (0,) * nd)

    return pl.pallas_call(
        down_kernel,
        grid=(1,),
        in_specs=[full((N, Cin, Lp)),
                  full((K, Cmid, Cin)), full((Cmid, 1)), full((Cmid, 1)),
                  full((K, Cout, Cmid)), full((Cout, 1)), full((Cout, 1))],
        out_specs=full((N, Cout, Lp)),
        out_shape=jax.ShapeDtypeStruct((N, Cout, Lp), jnp.float32),
        compiler_params=pltpu.CompilerParams(
            dimension_semantics=("arbitrary",)),
    )(xp, w1t, g1c, b1c, w2t, g2c, b2c)


def down_reference(x_ncl, w1, g1, b1, w2, g2, b2):
    """Pure-JAX reference mirroring PyTorch training-mode forward."""
    N, Cin, L = x_ncl.shape
    xp = jnp.max(x_ncl.reshape(N, Cin, L // 2, 2), axis=-1)

    def conv_bn_relu(x, w, g, b):
        y = jax.lax.conv_general_dilated(
            x, w, window_strides=(1,), padding=[(PAD, PAD)],
            dimension_numbers=('NCH', 'OIH', 'NCH'))
        mean = jnp.mean(y, axis=(0, 2), keepdims=True)
        var = jnp.mean((y - mean) ** 2, axis=(0, 2), keepdims=True)
        y = (y - mean) * jax.lax.rsqrt(var + BN_EPS)
        y = y * g.reshape(1, -1, 1) + b.reshape(1, -1, 1)
        return jnp.maximum(y, 0.0)

    return conv_bn_relu(conv_bn_relu(xp, w1, g1, b1), w2, g2, b2)


if __name__ == "__main__":
    # Down(in_channels=4, out_channels=8, factor=2) -> mid_channels = 8.
    # L = 256 so Lp = 128: the length axis exactly fills the 128-lane axis.
    N, Cin, L = 2, 4, 256
    Cmid, Cout = 8, 8

    key = jax.random.PRNGKey(0)
    kx, k1, k2, k3, k4, k5, k6 = jax.random.split(key, 7)

    x = jax.random.normal(kx, (N, Cin, L), jnp.float32)

    # PyTorch-layout conv weights (out, in, K); BN affine params (gamma, beta).
    w1 = 0.2 * jax.random.normal(k1, (Cmid, Cin, K), jnp.float32)
    w2 = 0.2 * jax.random.normal(k2, (Cout, Cmid, K), jnp.float32)
    g1 = 1.0 + 0.1 * jax.random.normal(k3, (Cmid,), jnp.float32)
    b1 = 0.1 * jax.random.normal(k4, (Cmid,), jnp.float32)
    g2 = 1.0 + 0.1 * jax.random.normal(k5, (Cout,), jnp.float32)
    b2 = 0.1 * jax.random.normal(k6, (Cout,), jnp.float32)

    out = jax.block_until_ready(down_forward(x, w1, g1, b1, w2, g2, b2))
    ref = down_reference(x, w1, g1, b1, w2, g2, b2)

    assert out.shape == (N, Cout, L // 2), out.shape
    max_err = float(jnp.max(jnp.abs(out - ref)))
    assert max_err < 2e-3, max_err
    print("KERNEL_OK")
</pallas_src>

<mosaic_0001>
module attributes {stable_mosaic.version = 11 : i64} {
  func.func @down_kernel(%arg0: i32, %arg1: memref<2x4x128xf32, #tpu.memory_space<vmem>>, %arg2: memref<7x8x4xf32, #tpu.memory_space<vmem>>, %arg3: memref<8x1xf32, #tpu.memory_space<vmem>>, %arg4: memref<8x1xf32, #tpu.memory_space<vmem>>, %arg5: memref<7x8x8xf32, #tpu.memory_space<vmem>>, %arg6: memref<8x1xf32, #tpu.memory_space<vmem>>, %arg7: memref<8x1xf32, #tpu.memory_space<vmem>>, %arg8: memref<2x8x128xf32, #tpu.memory_space<vmem>>) attributes {dimension_semantics = [#tpu.dimension_semantics<arbitrary>], iteration_bounds = array<i64: 1>, scalar_prefetch = 0 : i64, scratch_operands = 0 : i64, tpu.core_type = #tpu.core_type<tc>, window_params = [{pipeline_mode = #tpu.pipeline_mode<synchronous>, transform_indices = @transform_0, window_bounds = array<i64: 2, 4, 128>}, {pipeline_mode = #tpu.pipeline_mode<synchronous>, transform_indices = @transform_1, window_bounds = array<i64: 7, 8, 4>}, {pipeline_mode = #tpu.pipeline_mode<synchronous>, transform_indices = @transform_2, window_bounds = array<i64: 8, 1>}, {pipeline_mode = #tpu.pipeline_mode<synchronous>, transform_indices = @transform_3, window_bounds = array<i64: 8, 1>}, {pipeline_mode = #tpu.pipeline_mode<synchronous>, transform_indices = @transform_4, window_bounds = array<i64: 7, 8, 8>}, {pipeline_mode = #tpu.pipeline_mode<synchronous>, transform_indices = @transform_5, window_bounds = array<i64: 8, 1>}, {pipeline_mode = #tpu.pipeline_mode<synchronous>, transform_indices = @transform_6, window_bounds = array<i64: 8, 1>}, {pipeline_mode = #tpu.pipeline_mode<synchronous>, transform_indices = @transform_7, window_bounds = array<i64: 2, 8, 128>}]} {
    %0 = tpu.iota {dimensions = array<i32: 1>} : vector<1x128xi32>
    %1 = tpu.concatenate %0, %0 in 1 : vector<1x128xi32>, vector<1x128xi32> -> vector<1x256xi32>
    %c0 = arith.constant 0 : index
    %c0_0 = arith.constant 0 : index
    %c0_1 = arith.constant 0 : index
    %2 = vector.load %arg1[%c0, %c0_0, %c0_1] : memref<2x4x128xf32, #tpu.memory_space<vmem>>, vector<1x4x128xf32>
    %3 = vector.shape_cast %2 : vector<1x4x128xf32> to vector<4x128xf32>
    %c1 = arith.constant 1 : index
    %c0_2 = arith.constant 0 : index
    %c0_3 = arith.constant 0 : index
    %4 = vector.load %arg1[%c1, %c0_2, %c0_3] : memref<2x4x128xf32, #tpu.memory_space<vmem>>, vector<1x4x128xf32>
    %5 = vector.shape_cast %4 : vector<1x4x128xf32> to vector<4x128xf32>
    %6 = tpu.concatenate %3, %5 in 1 : vector<4x128xf32>, vector<4x128xf32> -> vector<4x256xf32>
    %cst = arith.constant 0.000000e+00 : f32
    %7 = vector.broadcast %cst : f32 to vector<8x256xf32>
    %c3_i32 = arith.constant 3 : i32
    %8 = tpu.dynamic_rotate %6 by %c3_i32 dim 1 : vector<4x256xf32>, i32 -> vector<4x256xf32>
    %c-3_i32 = arith.constant -3 : i32
    %9 = vector.broadcast %c-3_i32 : i32 to vector<1x256xi32>
    %10 = arith.addi %1, %9 : vector<1x256xi32>
    %c0_i32 = arith.constant 0 : i32
    %11 = vector.broadcast %c0_i32 : i32 to vector<1x256xi32>
    %12 = arith.cmpi sge, %10, %11 : vector<1x256xi32>
    %c-3_i32_4 = arith.constant -3 : i32
    %13 = vector.broadcast %c-3_i32_4 : i32 to vector<1x256xi32>
    %14 = arith.addi %1, %13 : vector<1x256xi32>
    %c128_i32 = arith.constant 128 : i32
    %15 = vector.broadcast %c128_i32 : i32 to vector<1x256xi32>
    %16 = arith.cmpi slt, %14, %15 : vector<1x256xi32>
    %17 = arith.andi %12, %16 : vector<1x256xi1>
    %cst_5 = arith.constant 0.000000e+00 : f32
    %18 = vector.shape_cast %17 : vector<1x256xi1> to vector<1x256xi1>
    %19 = vector.broadcast %18 : vector<1x256xi1> to vector<4x256xi1>
    %20 = vector.broadcast %cst_5 : f32 to vector<4x256xf32>
    %21 = arith.select %19, %8, %20 : vector<4x256xi1>, vector<4x256xf32>
    %c0_6 = arith.constant 0 : index
    %c0_7 = arith.constant 0 : index
    %c0_8 = arith.constant 0 : index
    %22 = vector.load %arg2[%c0_6, %c0_7, %c0_8] : memref<7x8x4xf32, #tpu.memory_space<vmem>>, vector<1x8x4xf32>
    %23 = vector.shape_cast %22 : vector<1x8x4xf32> to vector<8x4xf32>
    %cst_9 = arith.constant dense<0.000000e+00> : vector<8x256xf32>
    %24 = tpu.matmul %23, %21, %cst_9 {dimension_numbers = #tpu.dot_dimension_numbers<[1], [0], [0], [1], [0, 0, 1, 1], [], []>} : vector<8x4xf32>, vector<4x256xf32>, vector<8x256xf32> -> vector<8x256xf32>
    %25 = arith.addf %7, %24 : vector<8x256xf32>
    %c2_i32 = arith.constant 2 : i32
    %26 = tpu.dynamic_rotate %6 by %c2_i32 dim 1 : vector<4x256xf32>, i32 -> vector<4x256xf32>
    %c-2_i32 = arith.constant -2 : i32
    %27 = vector.broadcast %c-2_i32 : i32 to vector<1x256xi32>
    %28 = arith.addi %1, %27 : vector<1x256xi32>
    %c0_i32_10 = arith.constant 0 : i32
    %29 = vector.broadcast %c0_i32_10 : i32 to vector<1x256xi32>
    %30 = arith.cmpi sge, %28, %29 : vector<1x256xi32>
    %c-2_i32_11 = arith.constant -2 : i32
    %31 = vector.broadcast %c-2_i32_11 : i32 to vector<1x256xi32>
    %32 = arith.addi %1, %31 : vector<1x256xi32>
    %c128_i32_12 = arith.constant 128 : i32
    %33 = vector.broadcast %c128_i32_12 : i32 to vector<1x256xi32>
    %34 = arith.cmpi slt, %32, %33 : vector<1x256xi32>
    %35 = arith.andi %30, %34 : vector<1x256xi1>
    %cst_13 = arith.constant 0.000000e+00 : f32
    %36 = vector.shape_cast %35 : vector<1x256xi1> to vector<1x256xi1>
    %37 = vector.broadcast %36 : vector<1x256xi1> to vector<4x256xi1>
    %38 = vector.broadcast %cst_13 : f32 to vector<4x256xf32>
    %39 = arith.select %37, %26, %38 : vector<4x256xi1>, vector<4x256xf32>
    %c1_14 = arith.constant 1 : index
    %c0_15 = arith.constant 0 : index
    %c0_16 = arith.constant 0 : index
    %40 = vector.load %arg2[%c1_14, %c0_15, %c0_16] : memref<7x8x4xf32, #tpu.memory_space<vmem>>, vector<1x8x4xf32>
    %41 = vector.shape_cast %40 : vector<1x8x4xf32> to vector<8x4xf32>
    %cst_17 = arith.constant dense<0.000000e+00> : vector<8x256xf32>
    %42 = tpu.matmul %41, %39, %cst_17 {dimension_numbers = #tpu.dot_dimension_numbers<[1], [0], [0], [1], [0, 0, 1, 1], [], []>} : vector<8x4xf32>, vector<4x256xf32>, vector<8x256xf32> -> vector<8x256xf32>
    %43 = arith.addf %25, %42 : vector<8x256xf32>
    %c1_i32 = arith.constant 1 : i32
    %44 = tpu.dynamic_rotate %6 by %c1_i32 dim 1 : vector<4x256xf32>, i32 -> vector<4x256xf32>
    %c-1_i32 = arith.constant -1 : i32
    %45 = vector.broadcast %c-1_i32 : i32 to vector<1x256xi32>
    %46 = arith.addi %1, %45 : vector<1x256xi32>
    %c0_i32_18 = arith.constant 0 : i32
    %47 = vector.broadcast %c0_i32_18 : i32 to vector<1x256xi32>
    %48 = arith.cmpi sge, %46, %47 : vector<1x256xi32>
    %c-1_i32_19 = arith.constant -1 : i32
    %49 = vector.broadcast %c-1_i32_19 : i32 to vector<1x256xi32>
    %50 = arith.addi %1, %49 : vector<1x256xi32>
    %c128_i32_20 = arith.constant 128 : i32
    %51 = vector.broadcast %c128_i32_20 : i32 to vector<1x256xi32>
    %52 = arith.cmpi slt, %50, %51 : vector<1x256xi32>
    %53 = arith.andi %48, %52 : vector<1x256xi1>
    %cst_21 = arith.constant 0.000000e+00 : f32
    %54 = vector.shape_cast %53 : vector<1x256xi1> to vector<1x256xi1>
    %55 = vector.broadcast %54 : vector<1x256xi1> to vector<4x256xi1>
    %56 = vector.broadcast %cst_21 : f32 to vector<4x256xf32>
    %57 = arith.select %55, %44, %56 : vector<4x256xi1>, vector<4x256xf32>
    %c2 = arith.constant 2 : index
    %c0_22 = arith.constant 0 : index
    %c0_23 = arith.constant 0 : index
    %58 = vector.load %arg2[%c2, %c0_22, %c0_23] : memref<7x8x4xf32, #tpu.memory_space<vmem>>, vector<1x8x4xf32>
    %59 = vector.shape_cast %58 : vector<1x8x4xf32> to vector<8x4xf32>
    %cst_24 = arith.constant dense<0.000000e+00> : vector<8x256xf32>
    %60 = tpu.matmul %59, %57, %cst_24 {dimension_numbers = #tpu.dot_dimension_numbers<[1], [0], [0], [1], [0, 0, 1, 1], [], []>} : vector<8x4xf32>, vector<4x256xf32>, vector<8x256xf32> -> vector<8x256xf32>
    %61 = arith.addf %43, %60 : vector<8x256xf32>
    %c3 = arith.constant 3 : index
    %c0_25 = arith.constant 0 : index
    %c0_26 = arith.constant 0 : index
    %62 = vector.load %arg2[%c3, %c0_25, %c0_26] : memref<7x8x4xf32, #tpu.memory_space<vmem>>, vector<1x8x4xf32>
    %63 = vector.shape_cast %62 : vector<1x8x4xf32> to vector<8x4xf32>
    %cst_27 = arith.constant dense<0.000000e+00> : vector<8x256xf32>
    %64 = tpu.matmul %63, %6, %cst_27 {dimension_numbers = #tpu.dot_dimension_numbers<[1], [0], [0], [1], [0, 0, 1, 1], [], []>} : vector<8x4xf32>, vector<4x256xf32>, vector<8x256xf32> -> vector<8x256xf32>
    %65 = arith.addf %61, %64 : vector<8x256xf32>
    %c255_i32 = arith.constant 255 : i32
    %66 = tpu.dynamic_rotate %6 by %c255_i32 dim 1 : vector<4x256xf32>, i32 -> vector<4x256xf32>
    %c1_i32_28 = arith.constant 1 : i32
    %67 = vector.broadcast %c1_i32_28 : i32 to vector<1x256xi32>
    %68 = arith.addi %1, %67 : vector<1x256xi32>
    %c0_i32_29 = arith.constant 0 : i32
    %69 = vector.broadcast %c0_i32_29 : i32 to vector<1x256xi32>
    %70 = arith.cmpi sge, %68, %69 : vector<1x256xi32>
    %c1_i32_30 = arith.constant 1 : i32
    %71 = vector.broadcast %c1_i32_30 : i32 to vector<1x256xi32>
    %72 = arith.addi %1, %71 : vector<1x256xi32>
    %c128_i32_31 = arith.constant 128 : i32
    %73 = vector.broadcast %c128_i32_31 : i32 to vector<1x256xi32>
    %74 = arith.cmpi slt, %72, %73 : vector<1x256xi32>
    %75 = arith.andi %70, %74 : vector<1x256xi1>
    %cst_32 = arith.constant 0.000000e+00 : f32
    %76 = vector.shape_cast %75 : vector<1x256xi1> to vector<1x256xi1>
    %77 = vector.broadcast %76 : vector<1x256xi1> to vector<4x256xi1>
    %78 = vector.broadcast %cst_32 : f32 to vector<4x256xf32>
    %79 = arith.select %77, %66, %78 : vector<4x256xi1>, vector<4x256xf32>
    %c4 = arith.constant 4 : index
    %c0_33 = arith.constant 0 : index
    %c0_34 = arith.constant 0 : index
    %80 = vector.load %arg2[%c4, %c0_33, %c0_34] : memref<7x8x4xf32, #tpu.memory_space<vmem>>, vector<1x8x4xf32>
    %81 = vector.shape_cast %80 : vector<1x8x4xf32> to vector<8x4xf32>
    %cst_35 = arith.constant dense<0.000000e+00> : vector<8x256xf32>
    %82 = tpu.matmul %81, %79, %cst_35 {dimension_numbers = #tpu.dot_dimension_numbers<[1], [0], [0], [1], [0, 0, 1, 1], [], []>} : vector<8x4xf32>, vector<4x256xf32>, vector<8x256xf32> -> vector<8x256xf32>
    %83 = arith.addf %65, %82 : vector<8x256xf32>
    %c254_i32 = arith.constant 254 : i32
    %84 = tpu.dynamic_rotate %6 by %c254_i32 dim 1 : vector<4x256xf32>, i32 -> vector<4x256xf32>
    %c2_i32_36 = arith.constant 2 : i32
    %85 = vector.broadcast %c2_i32_36 : i32 to vector<1x256xi32>
    %86 = arith.addi %1, %85 : vector<1x256xi32>
    %c0_i32_37 = arith.constant 0 : i32
    %87 = vector.broadcast %c0_i32_37 : i32 to vector<1x256xi32>
    %88 = arith.cmpi sge, %86, %87 : vector<1x256xi32>
    %c2_i32_38 = arith.constant 2 : i32
    %89 = vector.broadcast %c2_i32_38 : i32 to vector<1x256xi32>
    %90 = arith.addi %1, %89 : vector<1x256xi32>
    %c128_i32_39 = arith.constant 128 : i32
    %91 = vector.broadcast %c128_i32_39 : i32 to vector<1x256xi32>
    %92 = arith.cmpi slt, %90, %91 : vector<1x256xi32>
    %93 = arith.andi %88, %92 : vector<1x256xi1>
    %cst_40 = arith.constant 0.000000e+00 : f32
    %94 = vector.shape_cast %93 : vector<1x256xi1> to vector<1x256xi1>
    %95 = vector.broadcast %94 : vector<1x256xi1> to vector<4x256xi1>
    %96 = vector.broadcast %cst_40 : f32 to vector<4x256xf32>
    %97 = arith.select %95, %84, %96 : vector<4x256xi1>, vector<4x256xf32>
    %c5 = arith.constant 5 : index
    %c0_41 = arith.constant 0 : index
    %c0_42 = arith.constant 0 : index
    %98 = vector.load %arg2[%c5, %c0_41, %c0_42] : memref<7x8x4xf32, #tpu.memory_space<vmem>>, vector<1x8x4xf32>
    %99 = vector.shape_cast %98 : vector<1x8x4xf32> to vector<8x4xf32>
    %cst_43 = arith.constant dense<0.000000e+00> : vector<8x256xf32>
    %100 = tpu.matmul %99, %97, %cst_43 {dimension_numbers = #tpu.dot_dimension_numbers<[1], [0], [0], [1], [0, 0, 1, 1], [], []>} : vector<8x4xf32>, vector<4x256xf32>, vector<8x256xf32> -> vector<8x256xf32>
    %101 = arith.addf %83, %100 : vector<8x256xf32>
    %c253_i32 = arith.constant 253 : i32
    %102 = tpu.dynamic_rotate %6 by %c253_i32 dim 1 : vector<4x256xf32>, i32 -> vector<4x256xf32>
    %c3_i32_44 = arith.constant 3 : i32
    %103 = vector.broadcast %c3_i32_44 : i32 to vector<1x256xi32>
    %104 = arith.addi %1, %103 : vector<1x256xi32>
    %c0_i32_45 = arith.constant 0 : i32
    %105 = vector.broadcast %c0_i32_45 : i32 to vector<1x256xi32>
    %106 = arith.cmpi sge, %104, %105 : vector<1x256xi32>
    %c3_i32_46 = arith.constant 3 : i32
    %107 = vector.broadcast %c3_i32_46 : i32 to vector<1x256xi32>
    %108 = arith.addi %1, %107 : vector<1x256xi32>
    %c128_i32_47 = arith.constant 128 : i32
    %109 = vector.broadcast %c128_i32_47 : i32 to vector<1x256xi32>
    %110 = arith.cmpi slt, %108, %109 : vector<1x256xi32>
    %111 = arith.andi %106, %110 : vector<1x256xi1>
    %cst_48 = arith.constant 0.000000e+00 : f32
    %112 = vector.shape_cast %111 : vector<1x256xi1> to vector<1x256xi1>
    %113 = vector.broadcast %112 : vector<1x256xi1> to vector<4x256xi1>
    %114 = vector.broadcast %cst_48 : f32 to vector<4x256xf32>
    %115 = arith.select %113, %102, %114 : vector<4x256xi1>, vector<4x256xf32>
    %c6 = arith.constant 6 : index
    %c0_49 = arith.constant 0 : index
    %c0_50 = arith.constant 0 : index
    %116 = vector.load %arg2[%c6, %c0_49, %c0_50] : memref<7x8x4xf32, #tpu.memory_space<vmem>>, vector<1x8x4xf32>
    %117 = vector.shape_cast %116 : vector<1x8x4xf32> to vector<8x4xf32>
    %cst_51 = arith.constant dense<0.000000e+00> : vector<8x256xf32>
    %118 = tpu.matmul %117, %115, %cst_51 {dimension_numbers = #tpu.dot_dimension_numbers<[1], [0], [0], [1], [0, 0, 1, 1], [], []>} : vector<8x4xf32>, vector<4x256xf32>, vector<8x256xf32> -> vector<8x256xf32>
    %119 = arith.addf %101, %118 : vector<8x256xf32>
    %cst_52 = arith.constant dense<0.000000e+00> : vector<8xf32>
    %120 = vector.multi_reduction <add>, %119, %cst_52 [1] : vector<8x256xf32> to vector<8xf32>
    %121 = vector.shape_cast %120 : vector<8xf32> to vector<8x1xf32>
    %cst_53 = arith.constant 2.560000e+02 : f32
    %122 = vector.broadcast %cst_53 : f32 to vector<8x1xf32>
    %123 = arith.divf %121, %122 : vector<8x1xf32>
    %124 = vector.broadcast %123 : vector<8x1xf32> to vector<8x256xf32>
    %125 = arith.subf %119, %124 : vector<8x256xf32>
    %126 = arith.mulf %125, %125 : vector<8x256xf32>
    %cst_54 = arith.constant dense<0.000000e+00> : vector<8xf32>
    %127 = vector.multi_reduction <add>, %126, %cst_54 [1] : vector<8x256xf32> to vector<8xf32>
    %128 = vector.shape_cast %127 : vector<8xf32> to vector<8x1xf32>
    %cst_55 = arith.constant 2.560000e+02 : f32
    %129 = vector.broadcast %cst_55 : f32 to vector<8x1xf32>
    %130 = arith.divf %128, %129 : vector<8x1xf32>
    %cst_56 = arith.constant 9.99999974E-6 : f32
    %131 = vector.broadcast %cst_56 : f32 to vector<8x1xf32>
    %132 = arith.addf %130, %131 : vector<8x1xf32>
    %133 = math.rsqrt %132 : vector<8x1xf32>
    %134 = vector.broadcast %133 : vector<8x1xf32> to vector<8x256xf32>
    %135 = arith.mulf %125, %134 : vector<8x256xf32>
    %c0_57 = arith.constant 0 : index
    %c0_58 = arith.constant 0 : index
    %136 = vector.load %arg3[%c0_57, %c0_58] : memref<8x1xf32, #tpu.memory_space<vmem>>, vector<8x1xf32>
    %137 = vector.broadcast %136 : vector<8x1xf32> to vector<8x256xf32>
    %138 = arith.mulf %135, %137 : vector<8x256xf32>
    %c0_59 = arith.constant 0 : index
    %c0_60 = arith.constant 0 : index
    %139 = vector.load %arg4[%c0_59, %c0_60] : memref<8x1xf32, #tpu.memory_space<vmem>>, vector<8x1xf32>
    %140 = vector.broadcast %139 : vector<8x1xf32> to vector<8x256xf32>
    %141 = arith.addf %138, %140 : vector<8x256xf32>
    %cst_61 = arith.constant 0.000000e+00 : f32
    %142 = vector.broadcast %cst_61 : f32 to vector<8x256xf32>
    %143 = arith.maximumf %141, %142 : vector<8x256xf32>
    %cst_62 = arith.constant 0.000000e+00 : f32
    %144 = vector.broadcast %cst_62 : f32 to vector<8x256xf32>
    %c3_i32_63 = arith.constant 3 : i32
    %145 = tpu.dynamic_rotate %143 by %c3_i32_63 dim 1 : vector<8x256xf32>, i32 -> vector<8x256xf32>
    %c-3_i32_64 = arith.constant -3 : i32
    %146 = vector.broadcast %c-3_i32_64 : i32 to vector<1x256xi32>
    %147 = arith.addi %1, %146 : vector<1x256xi32>
    %c0_i32_65 = arith.constant 0 : i32
    %148 = vector.broadcast %c0_i32_65 : i32 to vector<1x256xi32>
    %149 = arith.cmpi sge, %147, %148 : vector<1x256xi32>
    %c-3_i32_66 = arith.constant -3 : i32
    %150 = vector.broadcast %c-3_i32_66 : i32 to vector<1x256xi32>
    %151 = arith.addi %1, %150 : vector<1x256xi32>
    %c128_i32_67 = arith.constant 128 : i32
    %152 = vector.broadcast %c128_i32_67 : i32 to vector<1x256xi32>
    %153 = arith.cmpi slt, %151, %152 : vector<1x256xi32>
    %154 = arith.andi %149, %153 : vector<1x256xi1>
    %cst_68 = arith.constant 0.000000e+00 : f32
    %155 = vector.shape_cast %154 : vector<1x256xi1> to vector<1x256xi1>
    %156 = vector.broadcast %155 : vector<1x256xi1> to vector<8x256xi1>
    %157 = vector.broadcast %cst_68 : f32 to vector<8x256xf32>
    %158 = arith.select %156, %145, %157 : vector<8x256xi1>, vector<8x256xf32>
    %c0_69 = arith.constant 0 : index
    %c0_70 = arith.constant 0 : index
    %c0_71 = arith.constant 0 : index
    %159 = vector.load %arg5[%c0_69, %c0_70, %c0_71] : memref<7x8x8xf32, #tpu.memory_space<vmem>>, vector<1x8x8xf32>
    %160 = vector.shape_cast %159 : vector<1x8x8xf32> to vector<8x8xf32>
    %cst_72 = arith.constant dense<0.000000e+00> : vector<8x256xf32>
    %161 = tpu.matmul %160, %158, %cst_72 {dimension_numbers = #tpu.dot_dimension_numbers<[1], [0], [0], [1], [0, 0, 1, 1], [], []>} : vector<8x8xf32>, vector<8x256xf32>, vector<8x256xf32> -> vector<8x256xf32>
    %162 = arith.addf %144, %161 : vector<8x256xf32>
    %c2_i32_73 = arith.constant 2 : i32
    %163 = tpu.dynamic_rotate %143 by %c2_i32_73 dim 1 : vector<8x256xf32>, i32 -> vector<8x256xf32>
    %c-2_i32_74 = arith.constant -2 : i32
    %164 = vector.broadcast %c-2_i32_74 : i32 to vector<1x256xi32>
    %165 = arith.addi %1, %164 : vector<1x256xi32>
    %c0_i32_75 = arith.constant 0 : i32
    %166 = vector.broadcast %c0_i32_75 : i32 to vector<1x256xi32>
    %167 = arith.cmpi sge, %165, %166 : vector<1x256xi32>
    %c-2_i32_76 = arith.constant -2 : i32
    %168 = vector.broadcast %c-2_i32_76 : i32 to vector<1x256xi32>
    %169 = arith.addi %1, %168 : vector<1x256xi32>
    %c128_i32_77 = arith.constant 128 : i32
    %170 = vector.broadcast %c128_i32_77 : i32 to vector<1x256xi32>
    %171 = arith.cmpi slt, %169, %170 : vector<1x256xi32>
    %172 = arith.andi %167, %171 : vector<1x256xi1>
    %cst_78 = arith.constant 0.000000e+00 : f32
    %173 = vector.shape_cast %172 : vector<1x256xi1> to vector<1x256xi1>
    %174 = vector.broadcast %173 : vector<1x256xi1> to vector<8x256xi1>
    %175 = vector.broadcast %cst_78 : f32 to vector<8x256xf32>
    %176 = arith.select %174, %163, %175 : vector<8x256xi1>, vector<8x256xf32>
    %c1_79 = arith.constant 1 : index
    %c0_80 = arith.constant 0 : index
    %c0_81 = arith.constant 0 : index
    %177 = vector.load %arg5[%c1_79, %c0_80, %c0_81] : memref<7x8x8xf32, #tpu.memory_space<vmem>>, vector<1x8x8xf32>
    %178 = vector.shape_cast %177 : vector<1x8x8xf32> to vector<8x8xf32>
    %cst_82 = arith.constant dense<0.000000e+00> : vector<8x256xf32>
    %179 = tpu.matmul %178, %176, %cst_82 {dimension_numbers = #tpu.dot_dimension_numbers<[1], [0], [0], [1], [0, 0, 1, 1], [], []>} : vector<8x8xf32>, vector<8x256xf32>, vector<8x256xf32> -> vector<8x256xf32>
    %180 = arith.addf %162, %179 : vector<8x256xf32>
    %c1_i32_83 = arith.constant 1 : i32
    %181 = tpu.dynamic_rotate %143 by %c1_i32_83 dim 1 : vector<8x256xf32>, i32 -> vector<8x256xf32>
    %c-1_i32_84 = arith.constant -1 : i32
    %182 = vector.broadcast %c-1_i32_84 : i32 to vector<1x256xi32>
    %183 = arith.addi %1, %182 : vector<1x256xi32>
    %c0_i32_85 = arith.constant 0 : i32
    %184 = vector.broadcast %c0_i32_85 : i32 to vector<1x256xi32>
    %185 = arith.cmpi sge, %183, %184 : vector<1x256xi32>
    %c-1_i32_86 = arith.constant -1 : i32
    %186 = vector.broadcast %c-1_i32_86 : i32 to vector<1x256xi32>
    %187 = arith.addi %1, %186 : vector<1x256xi32>
    %c128_i32_87 = arith.constant 128 : i32
    %188 = vector.broadcast %c128_i32_87 : i32 to vector<1x256xi32>
    %189 = arith.cmpi slt, %187, %188 : vector<1x256xi32>
    %190 = arith.andi %185, %189 : vector<1x256xi1>
    %cst_88 = arith.constant 0.000000e+00 : f32
    %191 = vector.shape_cast %190 : vector<1x256xi1> to vector<1x256xi1>
    %192 = vector.broadcast %191 : vector<1x256xi1> to vector<8x256xi1>
    %193 = vector.broadcast %cst_88 : f32 to vector<8x256xf32>
    %194 = arith.select %192, %181, %193 : vector<8x256xi1>, vector<8x256xf32>
    %c2_89 = arith.constant 2 : index
    %c0_90 = arith.constant 0 : index
    %c0_91 = arith.constant 0 : index
    %195 = vector.load %arg5[%c2_89, %c0_90, %c0_91] : memref<7x8x8xf32, #tpu.memory_space<vmem>>, vector<1x8x8xf32>
    %196 = vector.shape_cast %195 : vector<1x8x8xf32> to vector<8x8xf32>
    %cst_92 = arith.constant dense<0.000000e+00> : vector<8x256xf32>
    %197 = tpu.matmul %196, %194, %cst_92 {dimension_numbers = #tpu.dot_dimension_numbers<[1], [0], [0], [1], [0, 0, 1, 1], [], []>} : vector<8x8xf32>, vector<8x256xf32>, vector<8x256xf32> -> vector<8x256xf32>
    %198 = arith.addf %180, %197 : vector<8x256xf32>
    %c3_93 = arith.constant 3 : index
    %c0_94 = arith.constant 0 : index
    %c0_95 = arith.constant 0 : index
    %199 = vector.load %arg5[%c3_93, %c0_94, %c0_95] : memref<7x8x8xf32, #tpu.memory_space<vmem>>, vector<1x8x8xf32>
    %200 = vector.shape_cast %199 : vector<1x8x8xf32> to vector<8x8xf32>
    %cst_96 = arith.constant dense<0.000000e+00> : vector<8x256xf32>
    %201 = tpu.matmul %200, %143, %cst_96 {dimension_numbers = #tpu.dot_dimension_numbers<[1], [0], [0], [1], [0, 0, 1, 1], [], []>} : vector<8x8xf32>, vector<8x256xf32>, vector<8x256xf32> -> vector<8x256xf32>
    %202 = arith.addf %198, %201 : vector<8x256xf32>
    %c255_i32_97 = arith.constant 255 : i32
    %203 = tpu.dynamic_rotate %143 by %c255_i32_97 dim 1 : vector<8x256xf32>, i32 -> vector<8x256xf32>
    %c1_i32_98 = arith.constant 1 : i32
    %204 = vector.broadcast %c1_i32_98 : i32 to vector<1x256xi32>
    %205 = arith.addi %1, %204 : vector<1x256xi32>
    %c0_i32_99 = arith.constant 0 : i32
    %206 = vector.broadcast %c0_i32_99 : i32 to vector<1x256xi32>
    %207 = arith.cmpi sge, %205, %206 : vector<1x256xi32>
    %c1_i32_100 = arith.constant 1 : i32
    %208 = vector.broadcast %c1_i32_100 : i32 to vector<1x256xi32>
    %209 = arith.addi %1, %208 : vector<1x256xi32>
    %c128_i32_101 = arith.constant 128 : i32
    %210 = vector.broadcast %c128_i32_101 : i32 to vector<1x256xi32>
    %211 = arith.cmpi slt, %209, %210 : vector<1x256xi32>
    %212 = arith.andi %207, %211 : vector<1x256xi1>
    %cst_102 = arith.constant 0.000000e+00 : f32
    %213 = vector.shape_cast %212 : vector<1x256xi1> to vector<1x256xi1>
    %214 = vector.broadcast %213 : vector<1x256xi1> to vector<8x256xi1>
    %215 = vector.broadcast %cst_102 : f32 to vector<8x256xf32>
    %216 = arith.select %214, %203, %215 : vector<8x256xi1>, vector<8x256xf32>
    %c4_103 = arith.constant 4 : index
    %c0_104 = arith.constant 0 : index
    %c0_105 = arith.constant 0 : index
    %217 = vector.load %arg5[%c4_103, %c0_104, %c0_105] : memref<7x8x8xf32, #tpu.memory_space<vmem>>, vector<1x8x8xf32>
    %218 = vector.shape_cast %217 : vector<1x8x8xf32> to vector<8x8xf32>
    %cst_106 = arith.constant dense<0.000000e+00> : vector<8x256xf32>
    %219 = tpu.matmul %218, %216, %cst_106 {dimension_numbers = #tpu.dot_dimension_numbers<[1], [0], [0], [1], [0, 0, 1, 1], [], []>} : vector<8x8xf32>, vector<8x256xf32>, vector<8x256xf32> -> vector<8x256xf32>
    %220 = arith.addf %202, %219 : vector<8x256xf32>
    %c254_i32_107 = arith.constant 254 : i32
    %221 = tpu.dynamic_rotate %143 by %c254_i32_107 dim 1 : vector<8x256xf32>, i32 -> vector<8x256xf32>
    %c2_i32_108 = arith.constant 2 : i32
    %222 = vector.broadcast %c2_i32_108 : i32 to vector<1x256xi32>
    %223 = arith.addi %1, %222 : vector<1x256xi32>
    %c0_i32_109 = arith.constant 0 : i32
    %224 = vector.broadcast %c0_i32_109 : i32 to vector<1x256xi32>
    %225 = arith.cmpi sge, %223, %224 : vector<1x256xi32>
    %c2_i32_110 = arith.constant 2 : i32
    %226 = vector.broadcast %c2_i32_110 : i32 to vector<1x256xi32>
    %227 = arith.addi %1, %226 : vector<1x256xi32>
    %c128_i32_111 = arith.constant 128 : i32
    %228 = vector.broadcast %c128_i32_111 : i32 to vector<1x256xi32>
    %229 = arith.cmpi slt, %227, %228 : vector<1x256xi32>
    %230 = arith.andi %225, %229 : vector<1x256xi1>
    %cst_112 = arith.constant 0.000000e+00 : f32
    %231 = vector.shape_cast %230 : vector<1x256xi1> to vector<1x256xi1>
    %232 = vector.broadcast %231 : vector<1x256xi1> to vector<8x256xi1>
    %233 = vector.broadcast %cst_112 : f32 to vector<8x256xf32>
    %234 = arith.select %232, %221, %233 : vector<8x256xi1>, vector<8x256xf32>
    %c5_113 = arith.constant 5 : index
    %c0_114 = arith.constant 0 : index
    %c0_115 = arith.constant 0 : index
    %235 = vector.load %arg5[%c5_113, %c0_114, %c0_115] : memref<7x8x8xf32, #tpu.memory_space<vmem>>, vector<1x8x8xf32>
    %236 = vector.shape_cast %235 : vector<1x8x8xf32> to vector<8x8xf32>
    %cst_116 = arith.constant dense<0.000000e+00> : vector<8x256xf32>
    %237 = tpu.matmul %236, %234, %cst_116 {dimension_numbers = #tpu.dot_dimension_numbers<[1], [0], [0], [1], [0, 0, 1, 1], [], []>} : vector<8x8xf32>, vector<8x256xf32>, vector<8x256xf32> -> vector<8x256xf32>
    %238 = arith.addf %220, %237 : vector<8x256xf32>
    %c253_i32_117 = arith.constant 253 : i32
    %239 = tpu.dynamic_rotate %143 by %c253_i32_117 dim 1 : vector<8x256xf32>, i32 -> vector<8x256xf32>
    %c3_i32_118 = arith.constant 3 : i32
    %240 = vector.broadcast %c3_i32_118 : i32 to vector<1x256xi32>
    %241 = arith.addi %1, %240 : vector<1x256xi32>
    %c0_i32_119 = arith.constant 0 : i32
    %242 = vector.broadcast %c0_i32_119 : i32 to vector<1x256xi32>
    %243 = arith.cmpi sge, %241, %242 : vector<1x256xi32>
    %c3_i32_120 = arith.constant 3 : i32
    %244 = vector.broadcast %c3_i32_120 : i32 to vector<1x256xi32>
    %245 = arith.addi %1, %244 : vector<1x256xi32>
    %c128_i32_121 = arith.constant 128 : i32
    %246 = vector.broadcast %c128_i32_121 : i32 to vector<1x256xi32>
    %247 = arith.cmpi slt, %245, %246 : vector<1x256xi32>
    %248 = arith.andi %243, %247 : vector<1x256xi1>
    %cst_122 = arith.constant 0.000000e+00 : f32
    %249 = vector.shape_cast %248 : vector<1x256xi1> to vector<1x256xi1>
    %250 = vector.broadcast %249 : vector<1x256xi1> to vector<8x256xi1>
    %251 = vector.broadcast %cst_122 : f32 to vector<8x256xf32>
    %252 = arith.select %250, %239, %251 : vector<8x256xi1>, vector<8x256xf32>
    %c6_123 = arith.constant 6 : index
    %c0_124 = arith.constant 0 : index
    %c0_125 = arith.constant 0 : index
    %253 = vector.load %arg5[%c6_123, %c0_124, %c0_125] : memref<7x8x8xf32, #tpu.memory_space<vmem>>, vector<1x8x8xf32>
    %254 = vector.shape_cast %253 : vector<1x8x8xf32> to vector<8x8xf32>
    %cst_126 = arith.constant dense<0.000000e+00> : vector<8x256xf32>
    %255 = tpu.matmul %254, %252, %cst_126 {dimension_numbers = #tpu.dot_dimension_numbers<[1], [0], [0], [1], [0, 0, 1, 1], [], []>} : vector<8x8xf32>, vector<8x256xf32>, vector<8x256xf32> -> vector<8x256xf32>
    %256 = arith.addf %238, %255 : vector<8x256xf32>
    %cst_127 = arith.constant dense<0.000000e+00> : vector<8xf32>
    %257 = vector.multi_reduction <add>, %256, %cst_127 [1] : vector<8x256xf32> to vector<8xf32>
    %258 = vector.shape_cast %257 : vector<8xf32> to vector<8x1xf32>
    %cst_128 = arith.constant 2.560000e+02 : f32
    %259 = vector.broadcast %cst_128 : f32 to vector<8x1xf32>
    %260 = arith.divf %258, %259 : vector<8x1xf32>
    %261 = vector.broadcast %260 : vector<8x1xf32> to vector<8x256xf32>
    %262 = arith.subf %256, %261 : vector<8x256xf32>
    %263 = arith.mulf %262, %262 : vector<8x256xf32>
    %cst_129 = arith.constant dense<0.000000e+00> : vector<8xf32>
    %264 = vector.multi_reduction <add>, %263, %cst_129 [1] : vector<8x256xf32> to vector<8xf32>
    %265 = vector.shape_cast %264 : vector<8xf32> to vector<8x1xf32>
    %cst_130 = arith.constant 2.560000e+02 : f32
    %266 = vector.broadcast %cst_130 : f32 to vector<8x1xf32>
    %267 = arith.divf %265, %266 : vector<8x1xf32>
    %cst_131 = arith.constant 9.99999974E-6 : f32
    %268 = vector.broadcast %cst_131 : f32 to vector<8x1xf32>
    %269 = arith.addf %267, %268 : vector<8x1xf32>
    %270 = math.rsqrt %269 : vector<8x1xf32>
    %271 = vector.broadcast %270 : vector<8x1xf32> to vector<8x256xf32>
    %272 = arith.mulf %262, %271 : vector<8x256xf32>
    %c0_132 = arith.constant 0 : index
    %c0_133 = arith.constant 0 : index
    %273 = vector.load %arg6[%c0_132, %c0_133] : memref<8x1xf32, #tpu.memory_space<vmem>>, vector<8x1xf32>
    %274 = vector.broadcast %273 : vector<8x1xf32> to vector<8x256xf32>
    %275 = arith.mulf %272, %274 : vector<8x256xf32>
    %c0_134 = arith.constant 0 : index
    %c0_135 = arith.constant 0 : index
    %276 = vector.load %arg7[%c0_134, %c0_135] : memref<8x1xf32, #tpu.memory_space<vmem>>, vector<8x1xf32>
    %277 = vector.broadcast %276 : vector<8x1xf32> to vector<8x256xf32>
    %278 = arith.addf %275, %277 : vector<8x256xf32>
    %cst_136 = arith.constant 0.000000e+00 : f32
    %279 = vector.broadcast %cst_136 : f32 to vector<8x256xf32>
    %280 = arith.maximumf %278, %279 : vector<8x256xf32>
    %281 = vector.extract_strided_slice %280 {offsets = [0, 0], sizes = [8, 128], strides = [1, 1]} : vector<8x256xf32> to vector<8x128xf32>
    %c0_137 = arith.constant 0 : index
    %c0_138 = arith.constant 0 : index
    %c0_139 = arith.constant 0 : index
    %282 = vector.load %arg8[%c0_137, %c0_138, %c0_139] : memref<2x8x128xf32, #tpu.memory_space<vmem>>, vector<1x8x128xf32>
    %283 = vector.shape_cast %282 : vector<1x8x128xf32> to vector<8x128xf32>
    %284 = vector.shape_cast %281 : vector<8x128xf32> to vector<1x8x128xf32>
    tpu.vector_store %arg8[%c0_137, %c0_138, %c0_139], %284 {strides = array<i32>} : memref<2x8x128xf32, #tpu.memory_space<vmem>>, vector<1x8x128xf32>,
    %285 = vector.extract_strided_slice %280 {offsets = [0, 128], sizes = [8, 128], strides = [1, 1]} : vector<8x256xf32> to vector<8x128xf32>
    %c1_140 = arith.constant 1 : index
    %c0_141 = arith.constant 0 : index
    %c0_142 = arith.constant 0 : index
    %286 = vector.load %arg8[%c1_140, %c0_141, %c0_142] : memref<2x8x128xf32, #tpu.memory_space<vmem>>, vector<1x8x128xf32>
    %287 = vector.shape_cast %286 : vector<1x8x128xf32> to vector<8x128xf32>
    %288 = vector.shape_cast %285 : vector<8x128xf32> to vector<1x8x128xf32>
    tpu.vector_store %arg8[%c1_140, %c0_141, %c0_142], %288 {strides = array<i32>} : memref<2x8x128xf32, #tpu.memory_space<vmem>>, vector<1x8x128xf32>,
    return
  }
  func.func @transform_0(%arg0: i32) -> (i32, i32, i32) {
    %c0_i32 = arith.constant 0 : i32
    %c0_i32_0 = arith.constant 0 : i32
    %c0_i32_1 = arith.constant 0 : i32
    %c0_i32_2 = arith.constant 0 : i32
    return %c0_i32, %c0_i32_0, %c0_i32_1 : i32, i32, i32
  }
  func.func @transform_1(%arg0: i32) -> (i32, i32, i32) {
    %c0_i32 = arith.constant 0 : i32
    %c0_i32_0 = arith.constant 0 : i32
    %c0_i32_1 = arith.constant 0 : i32
    %c0_i32_2 = arith.constant 0 : i32
    return %c0_i32, %c0_i32_0, %c0_i32_1 : i32, i32, i32
  }
  func.func @transform_2(%arg0: i32) -> (i32, i32) {
    %c0_i32 = arith.constant 0 : i32
    %c0_i32_0 = arith.constant 0 : i32
    %c0_i32_1 = arith.constant 0 : i32
    return %c0_i32, %c0_i32_0 : i32, i32
  }
  func.func @transform_3(%arg0: i32) -> (i32, i32) {
    %c0_i32 = arith.constant 0 : i32
    %c0_i32_0 = arith.constant 0 : i32
    %c0_i32_1 = arith.constant 0 : i32
    return %c0_i32, %c0_i32_0 : i32, i32
  }
  func.func @transform_4(%arg0: i32) -> (i32, i32, i32) {
    %c0_i32 = arith.constant 0 : i32
    %c0_i32_0 = arith.constant 0 : i32
    %c0_i32_1 = arith.constant 0 : i32
    %c0_i32_2 = arith.constant 0 : i32
    return %c0_i32, %c0_i32_0, %c0_i32_1 : i32, i32, i32
  }
  func.func @transform_5(%arg0: i32) -> (i32, i32) {
    %c0_i32 = arith.constant 0 : i32
    %c0_i32_0 = arith.constant 0 : i32
    %c0_i32_1 = arith.constant 0 : i32
    return %c0_i32, %c0_i32_0 : i32, i32
  }
  func.func @transform_6(%arg0: i32) -> (i32, i32) {
    %c0_i32 = arith.constant 0 : i32
    %c0_i32_0 = arith.constant 0 : i32
    %c0_i32_1 = arith.constant 0 : i32
    return %c0_i32, %c0_i32_0 : i32, i32
  }
  func.func @transform_7(%arg0: i32) -> (i32, i32, i32) {
    %c0_i32 = arith.constant 0 : i32
    %c0_i32_0 = arith.constant 0 : i32
    %c0_i32_1 = arith.constant 0 : i32
    %c0_i32_2 = arith.constant 0 : i32
    return %c0_i32, %c0_i32_0, %c0_i32_1 : i32, i32, i32
  }
}

</mosaic_0001>

<bundles_post_ra>
// kernel: down_forward.1
= control target key start
LH: loop header
LB: loop body
LE: loop exit
PB: predicated region body
PF: predicated region fallthrough
CT: control target
= control target key end

     0   :  { %s1527_s26 = smov 2   ;;  %s1528_s27 = smov 3   ;;  %v1529_v2 = vmov 0.0   ;;  %v1530_v3 = vmov 0   ;;  %s1884_s0 = inlined_call_operand.vmem [shape: f32[2,4,128], index: 0, kind: input, shape index: {}]   ;;  %s1885_s1 = inlined_call_operand.vmem [shape: f32[7,8,4], index: 1, kind: input, shape index: {}]   ;;  %s1886_s2 = inlined_call_operand.vmem [shape: f32[8,1], index: 2, kind: input, shape index: {}]   ;;  %s1887_s3 = inlined_call_operand.vmem [shape: f32[8,1], index: 3, kind: input, shape index: {}]   ;;  %s1888_s4 = inlined_call_operand.vmem [shape: f32[7,8,8], index: 4, kind: input, shape index: {}]   ;;  %s1889_s5 = inlined_call_operand.vmem [shape: f32[8,1], index: 5, kind: input, shape index: {}]   ;;  %s1890_s6 = inlined_call_operand.vmem [shape: f32[8,1], index: 6, kind: input, shape index: {}]   ;;  %s1891_s7 = inlined_call_operand.hbm [shape: f32[2,8,128], index: 7, kind: output, shape index: {}]  }
   0x1   :  { %v1581_v0 = vld [vmem:[%s1884_s0] sm:$0xf]  ;;  %v1590_v1 = vld [vmem:[%s1884_s0 + $0x4] sm:$0xf]  ;;  %148 = vmatprep.mubr.f32.mxu0 %v1529_v2  ;;  %1497 = vset.pattern.permute.xlu0 %v1530_v3 }
   0x2   :  { %52 = vrot.lane.b32.xlu0 %v1581_v0, %s1527_s26  ;;  %32 = vrot.lane.b32.xlu1 %v1581_v0, %s1528_s27 }
   0x3   :  { %1498 = vset.pattern.permute.xlu1 %v1530_v3  ;;  %853 = vmatprep.mubr.f32.mxu1 %v1529_v2 }
   0x4   :  { %12 = vsyncpa [#allocation3], 0  ;;  %s1531_s30 = smov 1   ;;  %s1532_s0 = smov 127   ;;  %v27_v4 = vlaneseq  ;;  %vm77_vm7 = vcmask 1043456   ;;  %vm73_vm8 = vcmask 31744  }
   0x5   :  { %s1533_s8 = smov 126   ;;  %s1534_s9 = smov 125   ;;  %v1410_v30 = vld [vmem:[%s1885_s1 + $0x8] sm:$0xff]  ;;  %v51_v39 = vld [vmem:[%s1885_s1] sm:$0xff]  ;;  %v1417_v48 = vld [vmem:[%s1885_s1 + $0x10] sm:$0xff] }
   0x6   :  { %54 = vrot.lane.b32.xlu0 %v1590_v1, %s1527_s26  ;;  %34 = vrot.lane.b32.xlu1 %v1590_v1, %s1528_s27  ;;  %v1616_v5 = vand.u32 127, %v27_v4  ;;  %v45_v8 = vshrl.u32 %v27_v4, 7  ;;  %v1421_v58 = vld [vmem:[%s1885_s1 + $0x18] sm:$0xff]  ;;  %v1458_v57 = vld [vmem:[%s1888_s4 + $0x30] sm:$0xff] }
   0x8   :  { %v39_v6 = vadd.s32 4294967293, %v1616_v5  ;;  %v59_v7 = vadd.s32 4294967294, %v1616_v5  ;;  %v242_v9 = vadd.s32 4294967295, %v1616_v5  ;;  %v1621_v10 = vsub.s32 0, %v45_v8 }
   0x9   :  { %vm56_vm3 = vcmp.lt.s32.totalorder %v1616_v5, 2  ;;  %vm36_vm4 = vcmp.lt.s32.totalorder %v1616_v5, 3  ;;  %vm239_vm9 = vcmp.lt.s32.totalorder %v1616_v5, 1  ;;  %v429_v33 = vadd.s32 1, %v1616_v5 }
   0xa   :  { %237 = vrot.lane.b32.xlu1 %v1590_v1, %s1531_s30  ;;  %235 = vrot.lane.b32.xlu0 %v1581_v0, %s1531_s30  ;;  %vm40_vm0 = vcmp.ge.s32.totalorder %v39_v6, 0  ;;  %vm60_vm1 = vcmp.ge.s32.totalorder %v59_v7, 0  ;;  %vm243_vm2 = vcmp.ge.s32.totalorder %v242_v9, 0  ;;  %v532_v42 = vadd.s32 2, %v1616_v5  ;;  %v1425_v6 = vld [vmem:[%s1885_s1 + $0x20] sm:$0xff] }
   0xb   :  { %v43_v11 = vsel %vm40_vm0, 1, %v1530_v3  ;;  %v63_v12 = vsel %vm60_vm1, 1, %v1530_v3  ;;  %v246_v17 = vsel %vm243_vm2, 1, %v1530_v3  ;;  %vm431_vm11 = vcmp.lt.s32.totalorder %v429_v33, 128 }
   0xc   :  { %v47_v13 = vrot.slane %v43_v11, %v1621_v10  ;;  %v67_v14 = vrot.slane %v63_v12, %v1621_v10  ;;  %v250_v20 = vrot.slane %v246_v17, %v1621_v10  ;;  %v433_v40 = vsel %vm431_vm11, 1, %v1530_v3  ;;  %v1433_v12 = vld [vmem:[%s1885_s1 + $0x30] sm:$0xff] }
   0xd   :  { %v437_v43 = vrot.slane %v433_v40, %v1621_v10  ;;  %vm426_vm12 = vcmp.lt.s32.totalorder %v1616_v5, 127  ;;  %vm534_vm13 = vcmp.lt.s32.totalorder %v532_v42, 128  ;;  %v635_v50 = vadd.s32 3, %v1616_v5 }
   0xe   :  { %424 = vrot.lane.b32.xlu1 %v1590_v1, %s1532_s0  ;;  %422 = vrot.lane.b32.xlu0 %v1581_v0, %s1532_s0  ;;  %vm1630_vm5 = vcmp.eq.s32.totalorder %v47_v13, 1  ;;  %vm1634_vm6 = vcmp.eq.s32.totalorder %v67_v14, 1  ;;  %vm1660_vm10 = vcmp.eq.s32.totalorder %v250_v20, 1  ;;  %v536_v49 = vsel %vm534_vm13, 1, %v1530_v3 }
   0xf   :  { %vm1693_vm14 = vcmp.eq.s32.totalorder %v437_v43, 1  ;;  %v540_v52 = vrot.slane %v536_v49, %v1621_v10  ;;  %vm529_vm15 = vcmp.lt.s32.totalorder %v1616_v5, 126  ;;  %vm637_vm0 = vcmp.lt.s32.totalorder %v635_v50, 128 }
  0x10   :  { %v639_v59 = vsel %vm637_vm0, 1, %v1530_v3  ;;  %vm632_vm2 = vcmp.lt.s32.totalorder %v1616_v5, 125  ;;  %v1372_v5 = vld [vmem:[%s1889_s5] sm:$0xff]  ;;  %s1535_s5 = smov [#allocation2]  }
  0x11   :  { %vm1715_vm1 = vcmp.eq.s32.totalorder %v540_v52, 1  ;;  %v643_v62 = vrot.slane %v639_v59, %v1621_v10  ;;  %v1429_v10 = vld [vmem:[%s1885_s1 + $0x28] sm:$0xff]  ;;  %v774_v52 = vld [vmem:[%s1888_s4] sm:$0xff]  ;;  %s1398_s18 = sshll.u32 %s1535_s5, 4  ;;  %s1399_s18 = int_to_ptr.vmem [resolvable:$true] %s1398_s18 }
  0x12   :  { %527 = vrot.lane.b32.xlu1 %v1590_v1, %s1533_s8  ;;  %525 = vrot.lane.b32.xlu0 %v1581_v0, %s1533_s8  ;;  %p1508_p1 = scmp.lt.s32.totalorder %s1399_s18, %s1399_s18 }
  0x13   :  { %vm1737_vm11 = vcmp.eq.s32.totalorder %v643_v62, 1 }
  0x16   :  { %630 = vrot.lane.b32.xlu1 %v1590_v1, %s1534_s9  ;;  %628 = vrot.lane.b32.xlu0 %v1581_v0, %s1534_s9 }
  0x74   :  { %v53_v15 = vpop.permute.xlu0 %52  ;;  %v33_v16 = vpop.permute.xlu1 %32 }
  0x78   :  { %v55_v21 = vpop.permute.xlu0 %54  ;;  %v35_v22 = vpop.permute.xlu1 %34 }
  0x79   :  { %v58_v23 = vsel %vm56_vm3, %v55_v21, %v53_v15  ;;  %v37_v24 = vsel %vm36_vm4, %v33_v16, %v35_v22  ;;  %v38_v25 = vsel %vm36_vm4, %v35_v22, %v33_v16  ;;  %v57_v26 = vsel %vm56_vm3, %v53_v15, %v55_v21  ;;  %v748_v16 = vld [vmem:[%s1886_s2] sm:$0xff] }
  0x7a   :  { %v50_v27 = vsel %vm1630_vm5, %v37_v24, 0.0  ;;  %v70_v28 = vsel %vm1634_vm6, %v57_v26, 0.0  ;;  %v69_v29 = vsel %vm1634_vm6, %v58_v23, 0.0  ;;  %v49_v31 = vsel %vm1630_vm5, %v38_v25, 0.0  ;;  %v756_v26 = vld [vmem:[%s1887_s3] sm:$0xff] }
  0x7b   :  { %1411 = vmatprep.subr.msk.mxu0 %vm77_vm7, %v70_v28 }
  0x7c   :  { %1412 = vmatpush1.msk.msra.mxu0 %vm77_vm7, %v69_v29  ;;  %v238_v34 = vpop.permute.xlu1 %237  ;;  %v236_v35 = vpop.permute.xlu0 %235 }
  0x7d   :  { %1413 = vmatmul.mubr.msk.f32.vlgmr.msra.gmra.mrb[0].mxu0 %vm73_vm8, %v1410_v30  ;;  %1414 = vmatprep.subr.msk.mxu0 %vm77_vm7, %v50_v27  ;;  %v240_v36 = vsel %vm239_vm9, %v236_v35, %v238_v34  ;;  %v241_v38 = vsel %vm239_vm9, %v238_v34, %v236_v35 }
  0x7e   :  { %1415 = vmatpush1.msk.msra.mxu0 %vm77_vm7, %v49_v31  ;;  %228 = vmatprep.mubr.f32.mxu0 %v1529_v2  ;;  %v253_v37 = vsel %vm1660_vm10, %v240_v36, 0.0  ;;  %v252_v41 = vsel %vm1660_vm10, %v241_v38, 0.0 }
  0x7f   :  { %1418 = vmatprep.subr.msk.mxu0 %vm77_vm7, %v253_v37 }
  0x80   :  { %v425_v44 = vpop.permute.xlu1 %424  ;;  %v423_v45 = vpop.permute.xlu0 %422 }
  0x81   :  { %v428_v46 = vsel %vm426_vm12, %v425_v44, %v423_v45  ;;  %v427_v55 = vsel %vm426_vm12, %v423_v45, %v425_v44 }
  0x82   :  { %v440_v51 = vsel %vm1693_vm14, %v428_v46, 0.0  ;;  %v439_v60 = vsel %vm1693_vm14, %v427_v55, 0.0  ;;  %v1437_v46 = vld [vmem:[%s1888_s4 + $0x8] sm:$0xff] }
  0x84   :  { %v528_v53 = vpop.permute.xlu1 %527  ;;  %v526_v54 = vpop.permute.xlu0 %525 }
  0x85   :  { %1416 = vmatmul.mubr.msk.f32.vlgmr.msra.gmra.mrb[0].mxu0 %vm73_vm8, %v51_v39  ;;  %v531_v56 = vsel %vm529_vm15, %v528_v53, %v526_v54 }
  0x86   :  { %1419 = vmatpush1.msk.msra.mxu0 %vm77_vm7, %v252_v41  ;;  %329 = vmatprep.mubr.f32.mxu0 %v1529_v2  ;;  %v543_v61 = vsel %vm1715_vm1, %v531_v56, 0.0  ;;  %v1444_v56 = vld [vmem:[%s1888_s4 + $0x10] sm:$0xff] }
  0x87   :  { %1422 = vmatprep.subr.msk.mxu0 %vm77_vm7, %v1590_v1  ;;  %v530_v1 = vsel %vm529_vm15, %v526_v54, %v528_v53 }
  0x88   :  { %v631_v63 = vpop.permute.xlu1 %630  ;;  %v542_v7 = vsel %vm1715_vm1, %v530_v1, 0.0 }
  0x8d   :  { %1420 = vmatmul.mubr.msk.f32.vlgmr.msra.gmra.mrb[0].mxu0 %vm73_vm8, %v1417_v48 }
  0x8e   :  { %1423 = vmatpush1.msk.msra.mxu0 %vm77_vm7, %v1581_v0  ;;  %413 = vmatprep.mubr.f32.mxu0 %v1529_v2  ;;  %v629_v0 = vpop.permute.xlu0 %628 }
  0x8f   :  { %1426 = vmatprep.subr.msk.mxu0 %vm77_vm7, %v440_v51  ;;  %v634_v3 = vsel %vm632_vm2, %v631_v63, %v629_v0  ;;  %v633_v9 = vsel %vm632_vm2, %v629_v0, %v631_v63  ;;  %v1450_v0 = vld [vmem:[%s1888_s4 + $0x20] sm:$0xff] }
  0x90   :  { %v646_v8 = vsel %vm1737_vm11, %v634_v3, 0.0  ;;  %v645_v11 = vsel %vm1737_vm11, %v633_v9, 0.0 }
  0x95   :  { %1424 = vmatmul.mubr.msk.f32.vlgmr.msra.gmra.mrb[0].mxu0 %vm73_vm8, %v1421_v58 }
  0x96   :  { %1427 = vmatpush1.msk.msra.mxu0 %vm77_vm7, %v439_v60  ;;  %516 = vmatprep.mubr.f32.mxu0 %v1529_v2  ;;  %v1448_v60 = vld [vmem:[%s1888_s4 + $0x18] sm:$0xff] }
  0x97   :  { %1430 = vmatprep.subr.msk.mxu0 %vm77_vm7, %v543_v61 }
  0x9d   :  { %1428 = vmatmul.mubr.msk.f32.vlgmr.msra.gmra.mrb[0].mxu0 %vm73_vm8, %v1425_v6 }
  0x9e   :  { %1431 = vmatpush1.msk.msra.mxu0 %vm77_vm7, %v542_v7  ;;  %619 = vmatprep.mubr.f32.mxu0 %v1529_v2  ;;  %v1454_v7 = vld [vmem:[%s1888_s4 + $0x28] sm:$0xff] }
  0x9f   :  { %1434 = vmatprep.subr.msk.mxu0 %vm77_vm7, %v646_v8 }
  0xa5   :  { %1432 = vmatmul.mubr.msk.f32.vlgmr.msra.gmra.mrb[0].mxu0 %vm73_vm8, %v1429_v10 }
  0xa6   :  { %1435 = vmatpush1.msk.msra.mxu0 %vm77_vm7, %v645_v11  ;;  %722 = vmatprep.mubr.f32.mxu0 %v1529_v2  ;;  %vm785_vm7 = vcmask 64512  }
  0xad   :  { %1436 = vmatmul.mubr.msk.f32.vlgmr.msra.gmra.mrb[0].mxu0 %vm73_vm8, %v1433_v12 }
 0x180   :  { %v724_v13 = vpop.f32.mrb[0].mxu0 }
 0x181   :  { %v726_v14 = vpop.f32.mrb[1].mxu0 }
 0x182   :  { %v731_v15 = vadd.f32 %v726_v14, %v724_v13 }
 0x184   :  { %732 = vadd.xlane.f32.xlu0 %v731_v15 }
 0x19a   :  { %751 = vperm.xlu0 %1497, %v748_v16  }
 0x211   :  { %v733_v17 = vpop.xlane.xlu0 %732 }
 0x212   :  { %v735_v20 = vmul.f32 0.00390625, %v733_v17  ;;  %v1380_v17 = vld [vmem:[%s1890_s6] sm:$0xff]  ;;  %s1503_s6 = scalar_lea.vmem %s1399_s18, 256 }
 0x213   :  { %p1504_p0 = scmp.ne.s32.totalorder %s1399_s18, %s1503_s6  ;;  %p1509_p2 = scmp.lt.s32.totalorder %s1503_s6, %s1503_s6 }
 0x214   :  { %v736_v21 = vsub.f32 %v724_v13, %v735_v20  ;;  %v737_v22 = vsub.f32 %v726_v14, %v735_v20 }
 0x215   :  { %p1510_p3 = por %p1509_p2, %p1508_p1 }
 0x216   :  { %v738_v23 = vmul.f32 %v736_v21, %v736_v21  ;;  %v739_v24 = vmul.f32 %v737_v22, %v737_v22 }
 0x217   :  { %p1511_p4 = pnand %p1510_p3, %p1504_p0 }
 0x218   :  { %v740_v25 = vadd.f32 %v739_v24, %v738_v23 }
 0x219   :  { %v752_v31 = vpop.permute.xlu0 %751 }
 0x21a   :  { %741 = vadd.xlane.f32.xlu1 %v740_v25 }
 0x22b   :  { %759 = vperm.xlu1 %1498, %v756_v26  }
 0x2a7   :  { %v742_v27 = vpop.xlane.xlu1 %741 }
 0x2a8   :  { %v743_v28 = vmul.f32 0.00390625, %v742_v27 }
 0x2aa   :  { %v744_v29 = vadd.f32 1e-05, %v743_v28 }
 0x2ab   :  { %v760_v35 = vpop.permute.xlu1 %759 }
 0x2ac   :  { %1499 = vrsqrt.f32 %v744_v29 }
 0x2b6   :  { %v1500_v30 = vpop.eup %1499 }
 0x2b7   :  { %v746_v33 = vmul.f32 %v1500_v30, %v736_v21  ;;  %v747_v34 = vmul.f32 %v1500_v30, %v737_v22 }
 0x2b9   :  { %v754_v36 = vmul.f32 %v752_v31, %v746_v33  ;;  %v755_v37 = vmul.f32 %v752_v31, %v747_v34 }
 0x2bb   :  { %v762_v38 = vadd.f32 %v760_v35, %v754_v36  ;;  %v763_v39 = vadd.f32 %v760_v35, %v755_v37 }
 0x2bd   :  { %v764_v40 = vmax.f32 %v762_v38, 0.0  ;;  %v765_v41 = vmax.f32 %v763_v39, 0.0 }
 0x2bf   :  { %1098 = vrot.lane.b32.xlu0 %v764_v40, %s1532_s0  ;;  %775 = vrot.lane.b32.xlu1 %v764_v40, %s1527_s26 }
 0x2c3   :  { %1184 = vrot.lane.b32.xlu0 %v764_v40, %s1533_s8  ;;  %777 = vrot.lane.b32.xlu1 %v765_v41, %s1527_s26 }
 0x2c7   :  { %1270 = vrot.lane.b32.xlu0 %v764_v40, %s1534_s9  ;;  %766 = vrot.lane.b32.xlu1 %v764_v40, %s1528_s27 }
 0x2cb   :  { %768 = vrot.lane.b32.xlu1 %v765_v41, %s1528_s27 }
 0x2cf   :  { %934 = vrot.lane.b32.xlu1 %v764_v40, %s1531_s30 }
 0x2d3   :  { %936 = vrot.lane.b32.xlu1 %v765_v41, %s1531_s30 }
 0x2d7   :  { %1100 = vrot.lane.b32.xlu1 %v765_v41, %s1532_s0 }
 0x2db   :  { %1186 = vrot.lane.b32.xlu1 %v765_v41, %s1533_s8 }
 0x2df   :  { %1272 = vrot.lane.b32.xlu1 %v765_v41, %s1534_s9 }
 0x331   :  { %v776_v42 = vpop.permute.xlu1 %775  ;;  %v1099_v18 = vpop.permute.xlu0 %1098 }
 0x335   :  { %v778_v43 = vpop.permute.xlu1 %777  ;;  %v1185_v61 = vpop.permute.xlu0 %1184 }
 0x336   :  { %v779_v44 = vsel %vm56_vm3, %v776_v42, %v778_v43  ;;  %v780_v45 = vsel %vm56_vm3, %v778_v43, %v776_v42 }
 0x337   :  { %1438 = vmatprep.subr.msk.mxu1 %vm1634_vm6, %v779_v44 }
 0x338   :  { %1439 = vmatpush1.msk.msra.mxu1 %vm1634_vm6, %v780_v45 }
 0x339   :  { %1440 = vmatmul.mubr.msk.f32.vlgmr.msra.gmra.mrb[0].mxu1 %vm785_vm7, %v1437_v46  ;;  %v767_v48 = vpop.permute.xlu1 %766  ;;  %v1271_v3 = vpop.permute.xlu0 %1270 }
 0x33a   :  { %927 = vmatprep.mubr.f32.mxu1 %v1529_v2 }
 0x33d   :  { %v769_v49 = vpop.permute.xlu1 %768 }
 0x33e   :  { %v770_v50 = vsel %vm36_vm4, %v767_v48, %v769_v49  ;;  %v771_v51 = vsel %vm36_vm4, %v769_v49, %v767_v48 }
 0x33f   :  { %1441 = vmatprep.subr.msk.mxu1 %vm1630_vm5, %v770_v50 }
 0x340   :  { %1442 = vmatpush1.msk.msra.mxu1 %vm1630_vm5, %v771_v51 }
 0x341   :  { %1443 = vmatmul.mubr.msk.f32.vlgmr.msra.gmra.mrb[0].mxu1 %vm785_vm7, %v774_v52  ;;  %v935_v19 = vpop.permute.xlu1 %934 }
 0x342   :  { %1011 = vmatprep.mubr.f32.mxu1 %v1529_v2 }
 0x345   :  { %v937_v53 = vpop.permute.xlu1 %936 }
 0x346   :  { %v938_v54 = vsel %vm239_vm9, %v935_v19, %v937_v53  ;;  %v939_v55 = vsel %vm239_vm9, %v937_v53, %v935_v19 }
 0x347   :  { %1445 = vmatprep.subr.msk.mxu1 %vm1660_vm10, %v938_v54 }
 0x348   :  { %1446 = vmatpush1.msk.msra.mxu1 %vm1660_vm10, %v939_v55 }
 0x349   :  { %1447 = vmatmul.mubr.msk.f32.vlgmr.msra.gmra.mrb[0].mxu1 %vm785_vm7, %v1444_v56  ;;  %1025 = vmatprep.subr.mxu1 %v765_v41  ;;  %v1101_v58 = vpop.permute.xlu1 %1100 }
 0x34a   :  { %v1103_v59 = vsel %vm426_vm12, %v1101_v58, %v1099_v18  ;;  %1026 = vmatpush1.msra.mxu1 %v764_v40  ;;  %1089 = vmatprep.mubr.f32.mxu1 %v1529_v2  ;;  %v1102_v62 = vsel %vm426_vm12, %v1099_v18, %v1101_v58 }
 0x34b   :  { %1451 = vmatprep.subr.msk.mxu1 %vm1693_vm14, %v1103_v59 }
 0x34d   :  { %v1187_v32 = vpop.permute.xlu1 %1186 }
 0x34e   :  { %v1189_v63 = vsel %vm529_vm15, %v1187_v32, %v1185_v61  ;;  %v1188_v6 = vsel %vm529_vm15, %v1185_v61, %v1187_v32 }
 0x351   :  { %1449 = vmatmul.mubr.msk.f32.vlgmr.msra.gmra.mrb[0].mxu1 %vm785_vm7, %v1448_v60  ;;  %v1273_v1 = vpop.permute.xlu1 %1272 }
 0x352   :  { %1452 = vmatpush1.msk.msra.mxu1 %vm1693_vm14, %v1102_v62  ;;  %1175 = vmatprep.mubr.f32.mxu1 %v1529_v2  ;;  %v1275_v47 = vsel %vm632_vm2, %v1273_v1, %v1271_v3  ;;  %v1274_v8 = vsel %vm632_vm2, %v1271_v3, %v1273_v1 }
 0x353   :  { %1455 = vmatprep.subr.msk.mxu1 %vm1715_vm1, %v1189_v63 }
 0x359   :  { %1453 = vmatmul.mubr.msk.f32.vlgmr.msra.gmra.mrb[0].mxu1 %vm785_vm7, %v1450_v0 }
 0x35a   :  { %1456 = vmatpush1.msk.msra.mxu1 %vm1715_vm1, %v1188_v6  ;;  %1261 = vmatprep.mubr.f32.mxu1 %v1529_v2 }
 0x35b   :  { %1459 = vmatprep.subr.msk.mxu1 %vm1737_vm11, %v1275_v47 }
 0x361   :  { %1457 = vmatmul.mubr.msk.f32.vlgmr.msra.gmra.mrb[0].mxu1 %vm785_vm7, %v1454_v7 }
 0x362   :  { %1460 = vmatpush1.msk.msra.mxu1 %vm1737_vm11, %v1274_v8  ;;  %1347 = vmatprep.mubr.f32.mxu1 %v1529_v2 }
 0x369   :  { %1461 = vmatmul.mubr.msk.f32.vlgmr.msra.gmra.mrb[0].mxu1 %vm785_vm7, %v1458_v57 }
 0x43c   :  { %v1349_v9 = vpop.f32.mrb[0].mxu1 }
 0x43d   :  { %v1351_v10 = vpop.f32.mrb[1].mxu1 }
 0x43e   :  { %v1356_v11 = vadd.f32 %v1351_v10, %v1349_v9 }
 0x440   :  { %1357 = vadd.xlane.f32.xlu0 %v1356_v11 }
 0x456   :  { %1375 = vperm.xlu0 %1497, %v1372_v5  }
 0x4cd   :  { %v1358_v12 = vpop.xlane.xlu0 %1357 }
 0x4ce   :  { %v1359_v4 = vmul.f32 0.00390625, %v1358_v12 }
 0x4d0   :  { %v1360_v13 = vsub.f32 %v1349_v9, %v1359_v4  ;;  %v1361_v14 = vsub.f32 %v1351_v10, %v1359_v4 }
 0x4d2   :  { %v1362_v2 = vmul.f32 %v1360_v13, %v1360_v13  ;;  %v1363_v15 = vmul.f32 %v1361_v14, %v1361_v14 }
 0x4d4   :  { %v1364_v16 = vadd.f32 %v1363_v15, %v1362_v2 }
 0x4d5   :  { %v1376_v26 = vpop.permute.xlu0 %1375 }
 0x4d6   :  { %1365 = vadd.xlane.f32.xlu1 %v1364_v16 }
 0x4e7   :  { %1383 = vperm.xlu1 %1498, %v1380_v17  }
 0x563   :  { %v1366_v20 = vpop.xlane.xlu1 %1365 }
 0x564   :  { %v1367_v21 = vmul.f32 0.00390625, %v1366_v20 }
 0x566   :  { %v1368_v22 = vadd.f32 1e-05, %v1367_v21 }
 0x567   :  { %v1384_v29 = vpop.permute.xlu1 %1383 }
 0x568   :  { %1501 = vrsqrt.f32 %v1368_v22 }
 0x572   :  { %v1502_v23 = vpop.eup %1501 }
 0x573   :  { %v1370_v24 = vmul.f32 %v1502_v23, %v1360_v13  ;;  %v1371_v25 = vmul.f32 %v1502_v23, %v1361_v14 }
 0x575   :  { %v1378_v27 = vmul.f32 %v1376_v26, %v1370_v24  ;;  %v1379_v28 = vmul.f32 %v1376_v26, %v1371_v25 }
 0x577   :  { %v1386_v30 = vadd.f32 %v1384_v29, %v1378_v27  ;;  %v1387_v31 = vadd.f32 %v1384_v29, %v1379_v28 }
 0x579   :  { %v1388_v33 = vmax.f32 %v1386_v30, 0.0  ;;  %v1389_v34 = vmax.f32 %v1387_v31, 0.0 }
 0x57b   :  { %1390 = vst [vmem:[#allocation2] sm:$0xff] %v1388_v33  ;;  %1392 = vst [vmem:[#allocation2 + $0x8] sm:$0xff] %v1389_v34 }
 0x57c   :  { %1514 = shalt.err (!%p1511_p4)
}
 0x57d   :  { %s1515_s21 = scalar_lea.hbm %s1891_s7, 256 }
 0x57e   :  { %p1516_p5 = scmp.ne.s32.totalorder %s1891_s7, %s1515_s21  ;;  %p1519_p6 = scmp.lt.u32.totalorder %s1515_s21, %s1891_s7 }
 0x580   :  { %p1521_p7 = pnand %p1519_p6, %p1516_p5 }
 0x582   :  { %1524 = shalt.err (!%p1521_p7)
}
 0x583   :  { %s1536_s1 = smov 128   ;;  %s1537_s28 = smov 8  }
 0x584   :  { %1404 = dma.vmem_to_hbm [thread:$0]  %s1399_s18, 256, %s1891_s7, [#allocation3], %s1536_s1, %s1536_s1, %s1537_s28  }
 0x585   :  { %1525 = dma.done.wait [#allocation3], 256  }
 0x586   :  { %1526 = vsyncadd [#allocation3], 4294967040 }
 0x587   :  { %1408 = vsyncpa [#allocation3], 1 }

</bundles_post_ra>
